<compile_context>
chip_gen: v7x
topology: tpu7x:2x2x1
jax: 0.10.0
libtpu: 0.0.40
codegen_flags: <defaults>
</compile_context>

<pallas_src>
import jax
import jax.numpy as jnp
from jax.experimental import pallas as pl
from jax.experimental.pallas import tpu as pltpu

LANE = 128


def _round_up(n, m):
    return ((n + m - 1) // m) * m


# --------------------------------------------------------------------------- #
# Kernel
# --------------------------------------------------------------------------- #
def pathdnn_kernel(x_ref,
                   w0_ref, b0_ref,
                   w1_ref, b1_ref,
                   w2_ref, b2_ref,
                   w3_ref, b3_ref,
                   out_ref):
    cdt = w0_ref.dtype  # MXU input dtype (f32 or bf16); accumulation is f32.

    x = x_ref[...]

    # pathway layer (mask already folded into w0) + ReLU
    h = jnp.dot(x, w0_ref[...], preferred_element_type=jnp.float32) + b0_ref[...]
    h = jnp.maximum(h, 0.0).astype(cdt)

    # layer1 + dropout (eval: identity) + ReLU
    h = jnp.dot(h, w1_ref[...], preferred_element_type=jnp.float32) + b1_ref[...]
    h = jnp.maximum(h, 0.0).astype(cdt)

    # layer2 + dropout (eval: identity) + ReLU
    h = jnp.dot(h, w2_ref[...], preferred_element_type=jnp.float32) + b2_ref[...]
    h = jnp.maximum(h, 0.0).astype(cdt)

    # output layer (no activation); narrow (n_out) result written directly.
    out = jnp.dot(h, w3_ref[...], preferred_element_type=jnp.float32) + b3_ref[...]
    out_ref[...] = out.astype(out_ref.dtype)


# --------------------------------------------------------------------------- #
# One-time parameter preparation (hoisted out of the per-call hot path)
# --------------------------------------------------------------------------- #
def prepare_params(params, *, compute_dtype=jnp.float32, lane=LANE):
    """Fold the pathway mask into w0, transpose all weights to (in, out), pad
    the hidden feature dims to 128 lanes (exact through ReLU: padded rows/cols
    are zero) and cast to the compute dtype.  n_in (first K) and n_out stay
    unpadded so x / out never need per-call feature padding."""
    n_pathway, n_in = params["pathway_w"].shape
    n_h1 = params["layer1_w"].shape[0]
    n_h2 = params["layer2_w"].shape[0]
    n_out = params["output_w"].shape[0]

    n_pw_p = _round_up(n_pathway, lane)
    n_h1_p = _round_up(n_h1, lane)
    n_h2_p = _round_up(n_h2, lane)

    def pad2(a, rows, cols):
        return jnp.pad(a, ((0, rows - a.shape[0]), (0, cols - a.shape[1])))

    def pad_bias(b, cols):
        return jnp.pad(b, (0, cols - b.shape[0]))[None, :].astype(jnp.float32)

    cdt = jnp.dtype(compute_dtype)
    w0t = pad2((params["pathway_w"] * params["pathway_mask"]).T, n_in, n_pw_p).astype(cdt)
    b0 = pad_bias(params["pathway_b"], n_pw_p)
    w1t = pad2(params["layer1_w"].T, n_pw_p, n_h1_p).astype(cdt)
    b1 = pad_bias(params["layer1_b"], n_h1_p)
    w2t = pad2(params["layer2_w"].T, n_h1_p, n_h2_p).astype(cdt)
    b2 = pad_bias(params["layer2_b"], n_h2_p)
    w3t = pad2(params["output_w"].T, n_h2_p, n_out).astype(cdt)
    b3 = pad_bias(params["output_b"], n_out)

    return {"weights": (w0t, b0, w1t, b1, w2t, b2, w3t, b3), "compute_dtype": cdt}


# --------------------------------------------------------------------------- #
# Batch-tile selection (VMEM-aware, megacore-friendly, low padding waste)
# --------------------------------------------------------------------------- #
def _choose_batch_tile(B, *, sublane, row_bytes, weight_bytes,
                       max_tile=1024, vmem_budget=40 << 20):
    B_al = _round_up(max(B, 1), sublane)
    avail = max(vmem_budget - weight_bytes, 4 << 20)
    cap = (avail // max(row_bytes, 1)) // sublane * sublane
    cap = max(sublane, min(max_tile, cap))

    if B_al <= cap:
        if B_al >= 4 * sublane:
            # two roughly equal tiles: feeds both v7x TensorCores with at most
            # sublane-1 rows of zero-padding waste.
            return _round_up(-(-B_al // 2), sublane)
        return B_al

    # batch spans several tiles: pick the largest tile <= cap that minimizes
    # zero-row padding (avoids the near-full-tile over-padding trap).
    best_tb = cap
    best_pad = _round_up(B_al, cap) - B_al
    tb = cap - sublane
    floor_tb = max(sublane, cap - 32 * sublane)
    while tb >= floor_tb and best_pad > 0:
        pad = _round_up(B_al, tb) - B_al
        if pad < best_pad:
            best_tb, best_pad = tb, pad
        tb -= sublane
    return best_tb


# --------------------------------------------------------------------------- #
# Forward wrapper
# --------------------------------------------------------------------------- #
def pathdnn_forward(x, prep, *, max_batch_tile=1024, vmem_budget_bytes=40 << 20,
                    single_buffer_weights=True):
    """x: (B, n_in) float array.  prep: output of prepare_params."""
    w0t, b0, w1t, b1, w2t, b2, w3t, b3 = prep["weights"]
    cdt = prep["compute_dtype"]
    act_bytes = cdt.itemsize
    sublane = 16 if act_bytes == 2 else 8

    B, n_in = x.shape
    assert n_in == w0t.shape[0], "x feature dim does not match pathway weight"
    n_pw_p, n_h1_p, n_h2_p = w0t.shape[1], w1t.shape[1], w2t.shape[1]
    n_out = w3t.shape[1]

    weight_bytes = sum(int(a.size) * a.dtype.itemsize
                       for a in (w0t, b0, w1t, b1, w2t, b2, w3t, b3))
    # per batch-row VMEM: double-buffered x tile + double-buffered out tile
    # + live f32 accumulators / compute-dtype copies of the intermediates.
    row_bytes = (2 * n_in * act_bytes + 2 * n_out * 4
                 + (n_pw_p + n_h1_p + n_h2_p) * (4 + act_bytes))

    TB = _choose_batch_tile(B, sublane=sublane, row_bytes=row_bytes,
                            weight_bytes=weight_bytes, max_tile=max_batch_tile,
                            vmem_budget=vmem_budget_bytes)
    B_pad = _round_up(B, TB)

    x_p = x.astype(cdt)                       # no-op in the f32 path
    if B_pad != B:                            # batch padding only when needed
        x_p = jnp.pad(x_p, ((0, B_pad - B), (0, 0)))

    grid = (B_pad // TB,)

    vmem_limit = int(min(max(2 * (weight_bytes + TB * row_bytes) + (4 << 20),
                             32 << 20), 56 << 20))
    compiler_params = pltpu.CompilerParams(
        dimension_semantics=("parallel",),    # v7x: shard batch over the 2 TCs
        vmem_limit_bytes=vmem_limit)

    flops = 2 * B_pad * (n_in * n_pw_p + n_pw_p * n_h1_p
                         + n_h1_p * n_h2_p + n_h2_p * n_out)
    bytes_accessed = B_pad * n_in * act_bytes + B_pad * n_out * 4 + weight_bytes
    cost = pl.CostEstimate(flops=int(flops), transcendentals=0,
                           bytes_accessed=int(bytes_accessed))

    def build(single_buffer):
        def resident_spec(a):
            # whole array, constant index map -> stays VMEM-resident across the
            # grid; single-buffered when supported (it is only fetched once).
            if single_buffer:
                return pl.BlockSpec(a.shape, lambda i: (0, 0),
                                    pipeline_mode=pl.Buffered(1))
            return pl.BlockSpec(a.shape, lambda i: (0, 0))

        in_specs = [
            pl.BlockSpec((TB, n_in), lambda i: (i, 0)),   # x tile streams
            resident_spec(w0t), resident_spec(b0),
            resident_spec(w1t), resident_spec(b1),
            resident_spec(w2t), resident_spec(b2),
            resident_spec(w3t), resident_spec(b3),
        ]
        out_specs = pl.BlockSpec((TB, n_out), lambda i: (i, 0))

        return pl.pallas_call(
            pathdnn_kernel,
            out_shape=jax.ShapeDtypeStruct((B_pad, n_out), jnp.float32),
            grid=grid,
            in_specs=in_specs,
            out_specs=out_specs,
            compiler_params=compiler_params,
            cost_estimate=cost,
        )

    call_args = (x_p, w0t, b0, w1t, b1, w2t, b2, w3t, b3)
    if single_buffer_weights:
        try:
            out_p = build(True)(*call_args)
        except Exception:
            # Fallback for jax versions that reject pl.Buffered(1) on the
            # top-level pipeline; genuine errors re-raise from the call below.
            out_p = build(False)(*call_args)
    else:
        out_p = build(False)(*call_args)

    return out_p if B_pad == B else out_p[:B]


# --------------------------------------------------------------------------- #
# Parameter init (mimics PyTorch defaults) and pure-JAX reference
# --------------------------------------------------------------------------- #
def init_params(key, n_in, n_pathway, n_hidden1, n_hidden2):
    ks = jax.random.split(key, 9)

    def linear_init(kw, kb, fan_in, fan_out):
        bound = 1.0 / jnp.sqrt(fan_in)   # nn.Linear default: U(-1/sqrt(fan_in), ...)
        w = jax.random.uniform(kw, (fan_out, fan_in), jnp.float32, -bound, bound)
        b = jax.random.uniform(kb, (fan_out,), jnp.float32, -bound, bound)
        return w, b

    pathway_mask = (jax.random.uniform(ks[0], (n_pathway, n_in)) < 0.5).astype(jnp.float32)
    w0, b0 = linear_init(ks[1], ks[2], n_in, n_pathway)
    w0 = w0 * pathway_mask   # PathDNN.__init__ pre-masks the pathway weight too
    w1, b1 = linear_init(ks[3], ks[4], n_pathway, n_hidden1)
    w2, b2 = linear_init(ks[5], ks[6], n_hidden1, n_hidden2)
    w3, b3 = linear_init(ks[7], ks[8], n_hidden2, 1)

    return {"pathway_mask": pathway_mask,
            "pathway_w": w0, "pathway_b": b0,
            "layer1_w": w1, "layer1_b": b1,
            "layer2_w": w2, "layer2_b": b2,
            "output_w": w3, "output_b": b3}


def reference_forward(x, p):
    # Pure-JAX reference of the PyTorch forward (eval-mode dropout).
    h = jnp.maximum(x @ (p["pathway_w"] * p["pathway_mask"]).T + p["pathway_b"], 0.0)
    h = jnp.maximum(h @ p["layer1_w"].T + p["layer1_b"], 0.0)
    h = jnp.maximum(h @ p["layer2_w"].T + p["layer2_b"], 0.0)
    return h @ p["output_w"].T + p["output_b"]


if __name__ == "__main__":
    key = jax.random.PRNGKey(0)
    k_x, k_p = jax.random.split(key)

    B, n_in, n_pathway, n_hidden1, n_hidden2 = 8, 32, 16, 32, 16
    x = jax.random.normal(k_x, (B, n_in), dtype=jnp.float32)
    params = init_params(k_p, n_in, n_pathway, n_hidden1, n_hidden2)
    ref = reference_forward(x, params)

    # f32 compute path: bit-accurate validation.
    prep_f32 = prepare_params(params, compute_dtype=jnp.float32)
    out_f32 = pathdnn_forward(x, prep_f32)
    jax.block_until_ready(out_f32)
    assert out_f32.shape == (B, 1)
    assert jnp.allclose(out_f32, ref, atol=1e-5, rtol=1e-5)

    # bf16 compute path (recommended fast eval config on v5e/v6e/v7x): loose check.
    prep_bf16 = prepare_params(params, compute_dtype=jnp.bfloat16)
    out_bf16 = pathdnn_forward(x, prep_bf16)
    jax.block_until_ready(out_bf16)
    assert out_bf16.shape == (B, 1)
    scale = float(jnp.max(jnp.abs(ref))) + 1e-3
    assert bool(jnp.all(jnp.isfinite(out_bf16)))
    assert float(jnp.max(jnp.abs(out_bf16 - ref))) < 0.05 * scale + 0.05

    print("KERNEL_OK")
</pallas_src>

<mosaic_0001>
module attributes {stable_mosaic.version = 11 : i64} {
  func.func @pathdnn_kernel(%arg0: i32, %arg1: memref<8x32xf32, #tpu.memory_space<vmem>>, %arg2: memref<32x128xf32, #tpu.memory_space<vmem>>, %arg3: memref<1x128xf32, #tpu.memory_space<vmem>>, %arg4: memref<128x128xf32, #tpu.memory_space<vmem>>, %arg5: memref<1x128xf32, #tpu.memory_space<vmem>>, %arg6: memref<128x128xf32, #tpu.memory_space<vmem>>, %arg7: memref<1x128xf32, #tpu.memory_space<vmem>>, %arg8: memref<128x1xf32, #tpu.memory_space<vmem>>, %arg9: memref<1x1xf32, #tpu.memory_space<vmem>>, %arg10: memref<8x1xf32, #tpu.memory_space<vmem>>) attributes {dimension_semantics = [#tpu.dimension_semantics<parallel>], iteration_bounds = array<i64: 1>, scalar_prefetch = 0 : i64, scratch_operands = 0 : i64, tpu.core_type = #tpu.core_type<tc>, window_params = [{transform_indices = @transform_0, window_bounds = array<i64: 8, 32>}, {pipeline_mode = #tpu.pipeline_mode<synchronous>, transform_indices = @transform_1, window_bounds = array<i64: 32, 128>}, {pipeline_mode = #tpu.pipeline_mode<synchronous>, transform_indices = @transform_2, window_bounds = array<i64: 1, 128>}, {pipeline_mode = #tpu.pipeline_mode<synchronous>, transform_indices = @transform_3, window_bounds = array<i64: 128, 128>}, {pipeline_mode = #tpu.pipeline_mode<synchronous>, transform_indices = @transform_4, window_bounds = array<i64: 1, 128>}, {pipeline_mode = #tpu.pipeline_mode<synchronous>, transform_indices = @transform_5, window_bounds = array<i64: 128, 128>}, {pipeline_mode = #tpu.pipeline_mode<synchronous>, transform_indices = @transform_6, window_bounds = array<i64: 1, 128>}, {pipeline_mode = #tpu.pipeline_mode<synchronous>, transform_indices = @transform_7, window_bounds = array<i64: 128, 1>}, {pipeline_mode = #tpu.pipeline_mode<synchronous>, transform_indices = @transform_8, window_bounds = array<i64: 1, 1>}, {transform_indices = @transform_9, window_bounds = array<i64: 8, 1>}]} {
    %c0 = arith.constant 0 : index
    %c0_0 = arith.constant 0 : index
    %0 = vector.load %arg1[%c0, %c0_0] : memref<8x32xf32, #tpu.memory_space<vmem>>, vector<8x32xf32>
    %c0_1 = arith.constant 0 : index
    %c0_2 = arith.constant 0 : index
    %1 = vector.load %arg2[%c0_1, %c0_2] : memref<32x128xf32, #tpu.memory_space<vmem>>, vector<32x128xf32>
    %cst = arith.constant dense<0.000000e+00> : vector<8x128xf32>
    %2 = tpu.matmul %0, %1, %cst {dimension_numbers = #tpu.dot_dimension_numbers<[1], [0], [0], [1], [0, 0, 1, 1], [], []>} : vector<8x32xf32>, vector<32x128xf32>, vector<8x128xf32> -> vector<8x128xf32>
    %c0_3 = arith.constant 0 : index
    %c0_4 = arith.constant 0 : index
    %3 = vector.load %arg3[%c0_3, %c0_4] : memref<1x128xf32, #tpu.memory_space<vmem>>, vector<1x128xf32>
    %4 = vector.broadcast %3 : vector<1x128xf32> to vector<8x128xf32>
    %5 = arith.addf %2, %4 : vector<8x128xf32>
    %cst_5 = arith.constant 0.000000e+00 : f32
    %6 = vector.broadcast %cst_5 : f32 to vector<8x128xf32>
    %7 = arith.maximumf %5, %6 : vector<8x128xf32>
    %c0_6 = arith.constant 0 : index
    %c0_7 = arith.constant 0 : index
    %8 = vector.load %arg4[%c0_6, %c0_7] : memref<128x128xf32, #tpu.memory_space<vmem>>, vector<128x128xf32>
    %cst_8 = arith.constant dense<0.000000e+00> : vector<8x128xf32>
    %9 = tpu.matmul %7, %8, %cst_8 {dimension_numbers = #tpu.dot_dimension_numbers<[1], [0], [0], [1], [0, 0, 1, 1], [], []>} : vector<8x128xf32>, vector<128x128xf32>, vector<8x128xf32> -> vector<8x128xf32>
    %c0_9 = arith.constant 0 : index
    %c0_10 = arith.constant 0 : index
    %10 = vector.load %arg5[%c0_9, %c0_10] : memref<1x128xf32, #tpu.memory_space<vmem>>, vector<1x128xf32>
    %11 = vector.broadcast %10 : vector<1x128xf32> to vector<8x128xf32>
    %12 = arith.addf %9, %11 : vector<8x128xf32>
    %cst_11 = arith.constant 0.000000e+00 : f32
    %13 = vector.broadcast %cst_11 : f32 to vector<8x128xf32>
    %14 = arith.maximumf %12, %13 : vector<8x128xf32>
    %c0_12 = arith.constant 0 : index
    %c0_13 = arith.constant 0 : index
    %15 = vector.load %arg6[%c0_12, %c0_13] : memref<128x128xf32, #tpu.memory_space<vmem>>, vector<128x128xf32>
    %cst_14 = arith.constant dense<0.000000e+00> : vector<8x128xf32>
    %16 = tpu.matmul %14, %15, %cst_14 {dimension_numbers = #tpu.dot_dimension_numbers<[1], [0], [0], [1], [0, 0, 1, 1], [], []>} : vector<8x128xf32>, vector<128x128xf32>, vector<8x128xf32> -> vector<8x128xf32>
    %c0_15 = arith.constant 0 : index
    %c0_16 = arith.constant 0 : index
    %17 = vector.load %arg7[%c0_15, %c0_16] : memref<1x128xf32, #tpu.memory_space<vmem>>, vector<1x128xf32>
    %18 = vector.broadcast %17 : vector<1x128xf32> to vector<8x128xf32>
    %19 = arith.addf %16, %18 : vector<8x128xf32>
    %cst_17 = arith.constant 0.000000e+00 : f32
    %20 = vector.broadcast %cst_17 : f32 to vector<8x128xf32>
    %21 = arith.maximumf %19, %20 : vector<8x128xf32>
    %c0_18 = arith.constant 0 : index
    %c0_19 = arith.constant 0 : index
    %22 = vector.load %arg8[%c0_18, %c0_19] : memref<128x1xf32, #tpu.memory_space<vmem>>, vector<128x1xf32>
    %cst_20 = arith.constant dense<0.000000e+00> : vector<8x1xf32>
    %23 = tpu.matmul %21, %22, %cst_20 {dimension_numbers = #tpu.dot_dimension_numbers<[1], [0], [0], [1], [0, 0, 1, 1], [], []>} : vector<8x128xf32>, vector<128x1xf32>, vector<8x1xf32> -> vector<8x1xf32>
    %c0_21 = arith.constant 0 : index
    %c0_22 = arith.constant 0 : index
    %24 = vector.load %arg9[%c0_21, %c0_22] : memref<1x1xf32, #tpu.memory_space<vmem>>, vector<1x1xf32>
    %25 = vector.broadcast %24 : vector<1x1xf32> to vector<8x1xf32>
    %26 = arith.addf %23, %25 : vector<8x1xf32>
    %c0_23 = arith.constant 0 : index
    %c0_24 = arith.constant 0 : index
    %27 = vector.load %arg10[%c0_23, %c0_24] : memref<8x1xf32, #tpu.memory_space<vmem>>, vector<8x1xf32>
    tpu.vector_store %arg10[%c0_23, %c0_24], %26 {strides = array<i32>} : memref<8x1xf32, #tpu.memory_space<vmem>>, vector<8x1xf32>,
    return
  }
  func.func @transform_0(%arg0: i32) -> (i32, i32) {
    %c0_i32 = arith.constant 0 : i32
    %c0_i32_0 = arith.constant 0 : i32
    return %arg0, %c0_i32 : i32, i32
  }
  func.func @transform_1(%arg0: i32) -> (i32, i32) {
    %c0_i32 = arith.constant 0 : i32
    %c0_i32_0 = arith.constant 0 : i32
    %c0_i32_1 = arith.constant 0 : i32
    return %c0_i32, %c0_i32_0 : i32, i32
  }
  func.func @transform_2(%arg0: i32) -> (i32, i32) {
    %c0_i32 = arith.constant 0 : i32
    %c0_i32_0 = arith.constant 0 : i32
    %c0_i32_1 = arith.constant 0 : i32
    return %c0_i32, %c0_i32_0 : i32, i32
  }
  func.func @transform_3(%arg0: i32) -> (i32, i32) {
    %c0_i32 = arith.constant 0 : i32
    %c0_i32_0 = arith.constant 0 : i32
    %c0_i32_1 = arith.constant 0 : i32
    return %c0_i32, %c0_i32_0 : i32, i32
  }
  func.func @transform_4(%arg0: i32) -> (i32, i32) {
    %c0_i32 = arith.constant 0 : i32
    %c0_i32_0 = arith.constant 0 : i32
    %c0_i32_1 = arith.constant 0 : i32
    return %c0_i32, %c0_i32_0 : i32, i32
  }
  func.func @transform_5(%arg0: i32) -> (i32, i32) {
    %c0_i32 = arith.constant 0 : i32
    %c0_i32_0 = arith.constant 0 : i32
    %c0_i32_1 = arith.constant 0 : i32
    return %c0_i32, %c0_i32_0 : i32, i32
  }
  func.func @transform_6(%arg0: i32) -> (i32, i32) {
    %c0_i32 = arith.constant 0 : i32
    %c0_i32_0 = arith.constant 0 : i32
    %c0_i32_1 = arith.constant 0 : i32
    return %c0_i32, %c0_i32_0 : i32, i32
  }
  func.func @transform_7(%arg0: i32) -> (i32, i32) {
    %c0_i32 = arith.constant 0 : i32
    %c0_i32_0 = arith.constant 0 : i32
    %c0_i32_1 = arith.constant 0 : i32
    return %c0_i32, %c0_i32_0 : i32, i32
  }
  func.func @transform_8(%arg0: i32) -> (i32, i32) {
    %c0_i32 = arith.constant 0 : i32
    %c0_i32_0 = arith.constant 0 : i32
    %c0_i32_1 = arith.constant 0 : i32
    return %c0_i32, %c0_i32_0 : i32, i32
  }
  func.func @transform_9(%arg0: i32) -> (i32, i32) {
    %c0_i32 = arith.constant 0 : i32
    %c0_i32_0 = arith.constant 0 : i32
    return %arg0, %c0_i32 : i32, i32
  }
}

module attributes {stable_mosaic.version = 11 : i64} {
  func.func @pathdnn_kernel(%arg0: i32, %arg1: memref<8x32xf32, #tpu.memory_space<vmem>>, %arg2: memref<32x128xf32, #tpu.memory_space<vmem>>, %arg3: memref<1x128xf32, #tpu.memory_space<vmem>>, %arg4: memref<128x128xf32, #tpu.memory_space<vmem>>, %arg5: memref<1x128xf32, #tpu.memory_space<vmem>>, %arg6: memref<128x128xf32, #tpu.memory_space<vmem>>, %arg7: memref<1x128xf32, #tpu.memory_space<vmem>>, %arg8: memref<128x1xf32, #tpu.memory_space<vmem>>, %arg9: memref<1x1xf32, #tpu.memory_space<vmem>>, %arg10: memref<8x1xf32, #tpu.memory_space<vmem>>) attributes {dimension_semantics = [#tpu.dimension_semantics<parallel>], iteration_bounds = array<i64: 1>, scalar_prefetch = 0 : i64, scratch_operands = 0 : i64, tpu.core_type = #tpu.core_type<tc>, window_params = [{transform_indices = @transform_0, window_bounds = array<i64: 8, 32>}, {pipeline_mode = #tpu.pipeline_mode<synchronous>, transform_indices = @transform_1, window_bounds = array<i64: 32, 128>}, {pipeline_mode = #tpu.pipeline_mode<synchronous>, transform_indices = @transform_2, window_bounds = array<i64: 1, 128>}, {pipeline_mode = #tpu.pipeline_mode<synchronous>, transform_indices = @transform_3, window_bounds = array<i64: 128, 128>}, {pipeline_mode = #tpu.pipeline_mode<synchronous>, transform_indices = @transform_4, window_bounds = array<i64: 1, 128>}, {pipeline_mode = #tpu.pipeline_mode<synchronous>, transform_indices = @transform_5, window_bounds = array<i64: 128, 128>}, {pipeline_mode = #tpu.pipeline_mode<synchronous>, transform_indices = @transform_6, window_bounds = array<i64: 1, 128>}, {pipeline_mode = #tpu.pipeline_mode<synchronous>, transform_indices = @transform_7, window_bounds = array<i64: 128, 1>}, {pipeline_mode = #tpu.pipeline_mode<synchronous>, transform_indices = @transform_8, window_bounds = array<i64: 1, 1>}, {transform_indices = @transform_9, window_bounds = array<i64: 8, 1>}]} {
    %c0 = arith.constant 0 : index
    %c0_0 = arith.constant 0 : index
    %0 = vector.load %arg1[%c0, %c0_0] : memref<8x32xf32, #tpu.memory_space<vmem>>, vector<8x32xf32>
    %c0_1 = arith.constant 0 : index
    %c0_2 = arith.constant 0 : index
    %1 = vector.load %arg2[%c0_1, %c0_2] : memref<32x128xf32, #tpu.memory_space<vmem>>, vector<32x128xf32>
    %cst = arith.constant dense<0.000000e+00> : vector<8x128xf32>
    %2 = tpu.matmul %0, %1, %cst {dimension_numbers = #tpu.dot_dimension_numbers<[1], [0], [0], [1], [0, 0, 1, 1], [], []>} : vector<8x32xf32>, vector<32x128xf32>, vector<8x128xf32> -> vector<8x128xf32>
    %c0_3 = arith.constant 0 : index
    %c0_4 = arith.constant 0 : index
    %3 = vector.load %arg3[%c0_3, %c0_4] : memref<1x128xf32, #tpu.memory_space<vmem>>, vector<1x128xf32>
    %4 = vector.broadcast %3 : vector<1x128xf32> to vector<8x128xf32>
    %5 = arith.addf %2, %4 : vector<8x128xf32>
    %cst_5 = arith.constant 0.000000e+00 : f32
    %6 = vector.broadcast %cst_5 : f32 to vector<8x128xf32>
    %7 = arith.maximumf %5, %6 : vector<8x128xf32>
    %c0_6 = arith.constant 0 : index
    %c0_7 = arith.constant 0 : index
    %8 = vector.load %arg4[%c0_6, %c0_7] : memref<128x128xf32, #tpu.memory_space<vmem>>, vector<128x128xf32>
    %cst_8 = arith.constant dense<0.000000e+00> : vector<8x128xf32>
    %9 = tpu.matmul %7, %8, %cst_8 {dimension_numbers = #tpu.dot_dimension_numbers<[1], [0], [0], [1], [0, 0, 1, 1], [], []>} : vector<8x128xf32>, vector<128x128xf32>, vector<8x128xf32> -> vector<8x128xf32>
    %c0_9 = arith.constant 0 : index
    %c0_10 = arith.constant 0 : index
    %10 = vector.load %arg5[%c0_9, %c0_10] : memref<1x128xf32, #tpu.memory_space<vmem>>, vector<1x128xf32>
    %11 = vector.broadcast %10 : vector<1x128xf32> to vector<8x128xf32>
    %12 = arith.addf %9, %11 : vector<8x128xf32>
    %cst_11 = arith.constant 0.000000e+00 : f32
    %13 = vector.broadcast %cst_11 : f32 to vector<8x128xf32>
    %14 = arith.maximumf %12, %13 : vector<8x128xf32>
    %c0_12 = arith.constant 0 : index
    %c0_13 = arith.constant 0 : index
    %15 = vector.load %arg6[%c0_12, %c0_13] : memref<128x128xf32, #tpu.memory_space<vmem>>, vector<128x128xf32>
    %cst_14 = arith.constant dense<0.000000e+00> : vector<8x128xf32>
    %16 = tpu.matmul %14, %15, %cst_14 {dimension_numbers = #tpu.dot_dimension_numbers<[1], [0], [0], [1], [0, 0, 1, 1], [], []>} : vector<8x128xf32>, vector<128x128xf32>, vector<8x128xf32> -> vector<8x128xf32>
    %c0_15 = arith.constant 0 : index
    %c0_16 = arith.constant 0 : index
    %17 = vector.load %arg7[%c0_15, %c0_16] : memref<1x128xf32, #tpu.memory_space<vmem>>, vector<1x128xf32>
    %18 = vector.broadcast %17 : vector<1x128xf32> to vector<8x128xf32>
    %19 = arith.addf %16, %18 : vector<8x128xf32>
    %cst_17 = arith.constant 0.000000e+00 : f32
    %20 = vector.broadcast %cst_17 : f32 to vector<8x128xf32>
    %21 = arith.maximumf %19, %20 : vector<8x128xf32>
    %c0_18 = arith.constant 0 : index
    %c0_19 = arith.constant 0 : index
    %22 = vector.load %arg8[%c0_18, %c0_19] : memref<128x1xf32, #tpu.memory_space<vmem>>, vector<128x1xf32>
    %cst_20 = arith.constant dense<0.000000e+00> : vector<8x1xf32>
    %23 = tpu.matmul %21, %22, %cst_20 {dimension_numbers = #tpu.dot_dimension_numbers<[1], [0], [0], [1], [0, 0, 1, 1], [], []>} : vector<8x128xf32>, vector<128x1xf32>, vector<8x1xf32> -> vector<8x1xf32>
    %c0_21 = arith.constant 0 : index
    %c0_22 = arith.constant 0 : index
    %24 = vector.load %arg9[%c0_21, %c0_22] : memref<1x1xf32, #tpu.memory_space<vmem>>, vector<1x1xf32>
    %25 = vector.broadcast %24 : vector<1x1xf32> to vector<8x1xf32>
    %26 = arith.addf %23, %25 : vector<8x1xf32>
    %c0_23 = arith.constant 0 : index
    %c0_24 = arith.constant 0 : index
    %27 = vector.load %arg10[%c0_23, %c0_24] : memref<8x1xf32, #tpu.memory_space<vmem>>, vector<8x1xf32>
    tpu.vector_store %arg10[%c0_23, %c0_24], %26 {strides = array<i32>} : memref<8x1xf32, #tpu.memory_space<vmem>>, vector<8x1xf32>,
    return
  }
  func.func @transform_0(%arg0: i32) -> (i32, i32) {
    %c0_i32 = arith.constant 0 : i32
    %c0_i32_0 = arith.constant 0 : i32
    return %arg0, %c0_i32 : i32, i32
  }
  func.func @transform_1(%arg0: i32) -> (i32, i32) {
    %c0_i32 = arith.constant 0 : i32
    %c0_i32_0 = arith.constant 0 : i32
    %c0_i32_1 = arith.constant 0 : i32
    return %c0_i32, %c0_i32_0 : i32, i32
  }
  func.func @transform_2(%arg0: i32) -> (i32, i32) {
    %c0_i32 = arith.constant 0 : i32
    %c0_i32_0 = arith.constant 0 : i32
    %c0_i32_1 = arith.constant 0 : i32
    return %c0_i32, %c0_i32_0 : i32, i32
  }
  func.func @transform_3(%arg0: i32) -> (i32, i32) {
    %c0_i32 = arith.constant 0 : i32
    %c0_i32_0 = arith.constant 0 : i32
    %c0_i32_1 = arith.constant 0 : i32
    return %c0_i32, %c0_i32_0 : i32, i32
  }
  func.func @transform_4(%arg0: i32) -> (i32, i32) {
    %c0_i32 = arith.constant 0 : i32
    %c0_i32_0 = arith.constant 0 : i32
    %c0_i32_1 = arith.constant 0 : i32
    return %c0_i32, %c0_i32_0 : i32, i32
  }
  func.func @transform_5(%arg0: i32) -> (i32, i32) {
    %c0_i32 = arith.constant 0 : i32
    %c0_i32_0 = arith.constant 0 : i32
    %c0_i32_1 = arith.constant 0 : i32
    return %c0_i32, %c0_i32_0 : i32, i32
  }
  func.func @transform_6(%arg0: i32) -> (i32, i32) {
    %c0_i32 = arith.constant 0 : i32
    %c0_i32_0 = arith.constant 0 : i32
    %c0_i32_1 = arith.constant 0 : i32
    return %c0_i32, %c0_i32_0 : i32, i32
  }
  func.func @transform_7(%arg0: i32) -> (i32, i32) {
    %c0_i32 = arith.constant 0 : i32
    %c0_i32_0 = arith.constant 0 : i32
    %c0_i32_1 = arith.constant 0 : i32
    return %c0_i32, %c0_i32_0 : i32, i32
  }
  func.func @transform_8(%arg0: i32) -> (i32, i32) {
    %c0_i32 = arith.constant 0 : i32
    %c0_i32_0 = arith.constant 0 : i32
    %c0_i32_1 = arith.constant 0 : i32
    return %c0_i32, %c0_i32_0 : i32, i32
  }
  func.func @transform_9(%arg0: i32) -> (i32, i32) {
    %c0_i32 = arith.constant 0 : i32
    %c0_i32_0 = arith.constant 0 : i32
    return %arg0, %c0_i32 : i32, i32
  }
}

</mosaic_0001>

<bundles_post_ra>
// kernel: tpu_custom_call.1
= control target key start
LH: loop header
LB: loop body
LE: loop exit
PB: predicated region body
PF: predicated region fallthrough
CT: control target
= control target key end

     0   :  { %s977_s0 = inlined_call_operand.vmem [shape: f32[8,32], index: 0, kind: input, shape index: {}]   ;;  %s978_s1 = inlined_call_operand.hbm [shape: f32[32,128], index: 1, kind: input, shape index: {}]   ;;  %s979_s2 = inlined_call_operand.vmem [shape: f32[1,128], index: 2, kind: input, shape index: {}]   ;;  %s980_s3 = inlined_call_operand.vmem [shape: f32[128,128], index: 3, kind: input, shape index: {}]   ;;  %s981_s4 = inlined_call_operand.vmem [shape: f32[1,128], index: 4, kind: input, shape index: {}]   ;;  %s982_s5 = inlined_call_operand.hbm [shape: f32[128,128], index: 5, kind: input, shape index: {}]   ;;  %s983_s6 = inlined_call_operand.vmem [shape: f32[1,128], index: 6, kind: input, shape index: {}]   ;;  %s984_s7 = inlined_call_operand.vmem [shape: f32[128,1], index: 7, kind: input, shape index: {}]   ;;  %s985_s8 = inlined_call_operand.<no memory space> [shape: f32[1,1], index: 8, kind: input, shape index: {}]   ;;  %s986_s9 = inlined_call_operand.vmem [shape: f32[8,1], index: 9, kind: output, shape index: {}]  }
   0x1   :  { %v14_v0 = vstv %s985_s8 }
   0x2   :  { %15 = vst [vmem:[#allocation2] sm:$0x1] %v14_v0 }
   0x3   :  { %16 = vsyncpa [#allocation4], 0 }
   0x4   :  { %17 = vsyncpa [#allocation6], 0  ;;  %s748_s11 = smov [#allocation3]   ;;  %s700_s15 = scalar_lea.hbm %s978_s1, 512 }
   0x5   :  { %s25_s12 = sshll.u32 %s748_s11, 4  ;;  %p701_p0 = scmp.ne.s32.totalorder %s978_s1, %s700_s15  ;;  %s26_s12 = int_to_ptr.vmem [resolvable:$true] %s25_s12 }
   0x6   :  { %p704_p1 = scmp.lt.u32.totalorder %s700_s15, %s978_s1 }
   0x8   :  { %p706_p2 = pnand %p704_p1, %p701_p0 }
   0xa   :  { %709 = shalt.err (!%p706_p2)
}
   0xb   :  { %s710_s8 = scalar_lea.vmem %s26_s12, 512  ;;  %p715_p4 = scmp.lt.s32.totalorder %s26_s12, %s26_s12 }
   0xc   :  { %p711_p3 = scmp.ne.s32.totalorder %s26_s12, %s710_s8  ;;  %p716_p5 = scmp.lt.s32.totalorder %s710_s8, %s710_s8 }
   0xe   :  { %p717_p6 = por %p716_p5, %p715_p4 }
  0x10   :  { %p718_p7 = pnand %p717_p6, %p711_p3 }
  0x12   :  { %721 = shalt.err (!%p718_p7)
}
  0x13   :  { %s749_s20 = smov 128   ;;  %s750_s21 = smov 8  }
  0x14   :  { %31 = dma.hbm_to_vmem [thread:$0]  %s978_s1, 512, %s26_s12, [#allocation4], %s749_s20, %s749_s20, %s750_s21  }
  0x15   :  { %s751_s24 = smov [#allocation5]   ;;  %s722_s28 = scalar_lea.hbm %s982_s5, 2048 }
  0x16   :  { %s43_s25 = sshll.u32 %s751_s24, 4  ;;  %p723_p8 = scmp.ne.s32.totalorder %s982_s5, %s722_s28  ;;  %s44_s25 = int_to_ptr.vmem [resolvable:$true] %s43_s25 }
  0x17   :  { %p726_p9 = scmp.lt.u32.totalorder %s722_s28, %s982_s5 }
  0x19   :  { %p728_p10 = pnand %p726_p9, %p723_p8 }
  0x1b   :  { %731 = shalt.err (!%p728_p10)
}
  0x1c   :  { %s732_s13 = scalar_lea.vmem %s44_s25, 2048  ;;  %p737_p12 = scmp.lt.s32.totalorder %s44_s25, %s44_s25 }
  0x1d   :  { %p733_p11 = scmp.ne.s32.totalorder %s44_s25, %s732_s13  ;;  %p738_p13 = scmp.lt.s32.totalorder %s732_s13, %s732_s13 }
  0x1f   :  { %p739_p0 = por %p738_p13, %p737_p12 }
  0x21   :  { %p740_p1 = pnand %p739_p0, %p733_p11 }
  0x23   :  { %743 = shalt.err (!%p740_p1)
}
  0x24   :  { %49 = dma.hbm_to_vmem [thread:$0]  %s982_s5, 2048, %s44_s25, [#allocation6], %s749_s20, %s749_s20, %s750_s21  }
  0x25   :  { %744 = dma.done.wait [#allocation4], 512  }
  0x26   :  { %745 = vsyncadd [#allocation4], 4294966784 }
  0x27   :  { %746 = dma.done.wait [#allocation6], 2048  }
  0x28   :  { %747 = vsyncadd [#allocation6], 4294965248  ;;  %v752_v1 = vmov 0.0|0.0   ;;  %vm753_vm0 = vmmov 0   ;;  %v754_v2 = vmov 0.0   ;;  %v63_v3 = vld [vmem:[#allocation3] sm:$0xff] }
  0x29   :  { %615 = vmatprep.subr.bf16.mxu0 %v752_v1  ;;  %507 = vmatprep.mubr.msk.f32.mxu0 %vm753_vm0, %v754_v2  ;;  %v64_v4 = vld [vmem:[#allocation3 + $0x8] sm:$0xff]  ;;  %v65_v5 = vld [vmem:[#allocation3 + $0x10] sm:$0xff]  ;;  %v66_v7 = vld [vmem:[#allocation3 + $0x18] sm:$0xff]  ;;  %vm74_vm1 = vcmask 261120   ;;  %vm430_vm2 = vcmask 7168  }
  0x2a   :  { %621 = vmatprep.subr.bf16.mxu1 %v752_v1  ;;  %542 = vmatprep.mubr.msk.f32.mxu1 %vm753_vm0, %v754_v2  ;;  %v616_v6 = vpack.c.bf16 %v64_v4, %v63_v3  ;;  %v149_v8 = vld [vmem:[%s980_s3] sm:$0xff]  ;;  %v150_v9 = vld [vmem:[%s980_s3 + $0x8] sm:$0xff]  ;;  %v151_v10 = vld [vmem:[%s980_s3 + $0x10] sm:$0xff]  ;;  %v619_v12 = vpack.c.bf16 %v66_v7, %v65_v5 }
  0x2b   :  { %v152_v11 = vld [vmem:[%s980_s3 + $0x18] sm:$0xff]  ;;  %v622_v13 = vpack.c.bf16 %v150_v9, %v149_v8  ;;  %v153_v15 = vld [vmem:[%s980_s3 + $0x20] sm:$0xff]  ;;  %v154_v16 = vld [vmem:[%s980_s3 + $0x28] sm:$0xff] }
  0x2c   :  { %617 = vmatpush3.bf16.msra.mxu0 %v616_v6  ;;  %v625_v14 = vpack.c.bf16 %v152_v11, %v151_v10  ;;  %v62_v17 = vld [vmem:[%s977_s0] sm:$0xff]  ;;  %v628_v18 = vpack.c.bf16 %v154_v16, %v153_v15  ;;  %v155_v19 = vld [vmem:[%s980_s3 + $0x30] sm:$0xff]  ;;  %v156_v20 = vld [vmem:[%s980_s3 + $0x38] sm:$0xff] }
  0x2d   :  { %618 = vmatprep.subr.bf16.mxu0 %v752_v1  ;;  %623 = vmatpush3.bf16.msra.mxu1 %v622_v13  ;;  %v631_v21 = vpack.c.bf16 %v156_v20, %v155_v19  ;;  %v157_v22 = vld [vmem:[%s980_s3 + $0x40] sm:$0xff]  ;;  %v158_v23 = vld [vmem:[%s980_s3 + $0x48] sm:$0xff]  ;;  %v159_v25 = vld [vmem:[%s980_s3 + $0x50] sm:$0xff] }
  0x2e   :  { %624 = vmatprep.subr.bf16.mxu1 %v752_v1  ;;  %v634_v24 = vpack.c.bf16 %v158_v23, %v157_v22  ;;  %v160_v26 = vld [vmem:[%s980_s3 + $0x58] sm:$0xff]  ;;  %v161_v28 = vld [vmem:[%s980_s3 + $0x60] sm:$0xff]  ;;  %v162_v29 = vld [vmem:[%s980_s3 + $0x68] sm:$0xff] }
  0x2f   :  { %v637_v27 = vpack.c.bf16 %v160_v26, %v159_v25  ;;  %v640_v30 = vpack.c.bf16 %v162_v29, %v161_v28  ;;  %v163_v31 = vld [vmem:[%s980_s3 + $0x70] sm:$0xff]  ;;  %v164_v32 = vld [vmem:[%s980_s3 + $0x78] sm:$0xff]  ;;  %v243_v34 = vld [vmem:[#allocation5] sm:$0xff] }
  0x30   :  { %620 = vmatpush3.bf16.msra.mxu0 %v619_v12  ;;  %v643_v33 = vpack.c.bf16 %v164_v32, %v163_v31  ;;  %v244_v35 = vld [vmem:[#allocation5 + $0x8] sm:$0xff]  ;;  %v245_v36 = vld [vmem:[#allocation5 + $0x10] sm:$0xff]  ;;  %v246_v38 = vld [vmem:[#allocation5 + $0x18] sm:$0xff] }
  0x31   :  { %645 = vmatprep.subr.bf16.mxu0 %v752_v1  ;;  %626 = vmatpush3.bf16.msra.mxu1 %v625_v14  ;;  %v646_v37 = vpack.c.bf16 %v244_v35, %v243_v34  ;;  %v649_v39 = vpack.c.bf16 %v246_v38, %v245_v36  ;;  %v247_v40 = vld [vmem:[#allocation5 + $0x20] sm:$0xff]  ;;  %v248_v41 = vld [vmem:[#allocation5 + $0x28] sm:$0xff]  ;;  %v249_v43 = vld [vmem:[#allocation5 + $0x30] sm:$0xff] }
  0x32   :  { %627 = vmatprep.subr.bf16.mxu1 %v752_v1  ;;  %v652_v42 = vpack.c.bf16 %v248_v41, %v247_v40  ;;  %v250_v44 = vld [vmem:[#allocation5 + $0x38] sm:$0xff]  ;;  %v251_v46 = vld [vmem:[#allocation5 + $0x40] sm:$0xff]  ;;  %v252_v47 = vld [vmem:[#allocation5 + $0x48] sm:$0xff] }
  0x33   :  { %508 = vmatmul.mubr.msk.f32.vlgmr.msra.gmra.mrb[0].mxu0 %vm74_vm1, %v62_v17  ;;  %v655_v45 = vpack.c.bf16 %v250_v44, %v249_v43  ;;  %v658_v48 = vpack.c.bf16 %v252_v47, %v251_v46  ;;  %v253_v49 = vld [vmem:[#allocation5 + $0x50] sm:$0xff]  ;;  %v254_v50 = vld [vmem:[#allocation5 + $0x58] sm:$0xff]  ;;  %v255_v52 = vld [vmem:[#allocation5 + $0x60] sm:$0xff] }
  0x34   :  { %577 = vmatprep.mubr.msk.f32.mxu0 %vm753_vm0, %v754_v2  ;;  %647 = vmatpush3.bf16.msra.mxu0 %v646_v37  ;;  %v661_v51 = vpack.c.bf16 %v254_v50, %v253_v49  ;;  %v256_v53 = vld [vmem:[#allocation5 + $0x68] sm:$0xff]  ;;  %v438_v55 = vld [vmem:[%s979_s2] ss:$0 sm:$0xff]  ;;  %v257_v60 = vld [vmem:[#allocation5 + $0x70] sm:$0xff] }
  0x35   :  { %629 = vmatpush3.bf16.msra.mxu1 %v628_v18  ;;  %648 = vmatprep.subr.bf16.mxu0 %v752_v1  ;;  %v664_v54 = vpack.c.bf16 %v256_v53, %v255_v52  ;;  %v258_v61 = vld [vmem:[#allocation5 + $0x78] sm:$0xff]  ;;  %v338_v0 = vld [vmem:[%s984_s7 + $0x8] sm:$0xff]  ;;  %v339_v3 = vld [vmem:[%s984_s7 + $0x10] sm:$0xff] }
  0x36   :  { %630 = vmatprep.subr.bf16.mxu1 %v752_v1  ;;  %v667_v62 = vpack.c.bf16 %v258_v61, %v257_v60  ;;  %v337_v63 = vld [vmem:[%s984_s7] sm:$0xff]  ;;  %v342_v7 = vld [vmem:[%s984_s7 + $0x28] sm:$0xff]  ;;  %v343_v9 = vld [vmem:[%s984_s7 + $0x30] sm:$0xff] }
  0x37   :  { %v670_v4 = vpack.c.bf16 %v338_v0, %v337_v63  ;;  %v341_v6 = vld [vmem:[%s984_s7 + $0x20] sm:$0xff]  ;;  %v344_v10 = vld [vmem:[%s984_s7 + $0x38] sm:$0xff]  ;;  %v346_v13 = vld [vmem:[%s984_s7 + $0x48] sm:$0xff] }
  0x38   :  { %650 = vmatpush3.bf16.msra.mxu0 %v649_v39  ;;  %v676_v8 = vpack.c.bf16 %v342_v7, %v341_v6  ;;  %v679_v11 = vpack.c.bf16 %v344_v10, %v343_v9  ;;  %v345_v12 = vld [vmem:[%s984_s7 + $0x40] sm:$0xff]  ;;  %v347_v15 = vld [vmem:[%s984_s7 + $0x50] sm:$0xff]  ;;  %v348_v16 = vld [vmem:[%s984_s7 + $0x58] sm:$0xff] }
  0x39   :  { %632 = vmatpush3.bf16.msra.mxu1 %v631_v21  ;;  %651 = vmatprep.subr.bf16.mxu0 %v752_v1  ;;  %v682_v14 = vpack.c.bf16 %v346_v13, %v345_v12  ;;  %v685_v17 = vpack.c.bf16 %v348_v16, %v347_v15  ;;  %v349_v18 = vld [vmem:[%s984_s7 + $0x60] sm:$0xff]  ;;  %v350_v19 = vld [vmem:[%s984_s7 + $0x68] sm:$0xff]  ;;  %v351_v26 = vld [vmem:[%s984_s7 + $0x70] sm:$0xff] }
  0x3a   :  { %633 = vmatprep.subr.bf16.mxu1 %v752_v1  ;;  %v688_v20 = vpack.c.bf16 %v350_v19, %v349_v18  ;;  %v440_v21 = vld [vmem:[%s981_s4] ss:$0 sm:$0xff] }
  0x3c   :  { %653 = vmatpush3.bf16.msra.mxu0 %v652_v42 }
  0x3d   :  { %635 = vmatpush3.bf16.msra.mxu1 %v634_v24  ;;  %654 = vmatprep.subr.bf16.mxu0 %v752_v1 }
  0x3e   :  { %636 = vmatprep.subr.bf16.mxu1 %v752_v1 }
  0x40   :  { %656 = vmatpush3.bf16.msra.mxu0 %v655_v45 }
  0x41   :  { %638 = vmatpush3.bf16.msra.mxu1 %v637_v27  ;;  %657 = vmatprep.subr.bf16.mxu0 %v752_v1  ;;  %v352_v27 = vld [vmem:[%s984_s7 + $0x78] sm:$0xff] }
  0x42   :  { %639 = vmatprep.subr.bf16.mxu1 %v752_v1  ;;  %v691_v28 = vpack.c.bf16 %v352_v27, %v351_v26 }
  0x44   :  { %659 = vmatpush3.bf16.msra.mxu0 %v658_v48 }
  0x45   :  { %641 = vmatpush3.bf16.msra.mxu1 %v640_v30  ;;  %660 = vmatprep.subr.bf16.mxu0 %v752_v1 }
  0x46   :  { %642 = vmatprep.subr.bf16.mxu1 %v752_v1 }
  0x48   :  { %662 = vmatpush3.bf16.msra.mxu0 %v661_v51 }
  0x49   :  { %644 = vmatpush3.bf16.msra.mxu1 %v643_v33  ;;  %663 = vmatprep.subr.bf16.mxu0 %v752_v1  ;;  %v442_v33 = vld [vmem:[#allocation2] ss:$0 sm:$0xff] }
  0x4a   :  { %669 = vmatprep.subr.bf16.mxu1 %v752_v1 }
  0x4c   :  { %665 = vmatpush3.bf16.msra.mxu0 %v664_v54 }
  0x4d   :  { %666 = vmatprep.subr.bf16.mxu0 %v752_v1 }
  0x50   :  { %668 = vmatpush3.bf16.msra.mxu0 %v667_v62 }
 0x106   :  { %v144_v56 = vpop.f32.mrb[0].mxu0 }
 0x107   :  { %v145_v57 = vadd.f32 %v438_v55, %v144_v56  ;;  %v509_v58 = vpop.f32.mrb[1].mxu0 }
 0x109   :  { %v148_v59 = vmax.f32 %v145_v57, 0.0 }
 0x10b   :  { %543 = vmatmul.mubr.f32.vlgmr.msra.gmra.mrb[0].mxu1 %v148_v59 }
 0x10c   :  { %612 = vmatprep.mubr.msk.f32.mxu1 %vm753_vm0, %v754_v2  ;;  %v340_v2 = vld [vmem:[%s984_s7 + $0x18] sm:$0xff]  ;;  %671 = vmatpush3.bf16.msra.mxu1 %v670_v4 }
 0x10d   :  { %v673_v5 = vpack.c.bf16 %v340_v2, %v339_v3  ;;  %672 = vmatprep.subr.bf16.mxu1 %v752_v1 }
 0x110   :  { %674 = vmatpush3.bf16.msra.mxu1 %v673_v5 }
 0x111   :  { %675 = vmatprep.subr.bf16.mxu1 %v752_v1 }
 0x114   :  { %677 = vmatpush3.bf16.msra.mxu1 %v676_v8 }
 0x115   :  { %678 = vmatprep.subr.bf16.mxu1 %v752_v1 }
 0x118   :  { %680 = vmatpush3.bf16.msra.mxu1 %v679_v11 }
 0x119   :  { %681 = vmatprep.subr.bf16.mxu1 %v752_v1 }
 0x11c   :  { %683 = vmatpush3.bf16.msra.mxu1 %v682_v14 }
 0x11d   :  { %684 = vmatprep.subr.bf16.mxu1 %v752_v1 }
 0x120   :  { %686 = vmatpush3.bf16.msra.mxu1 %v685_v17 }
 0x121   :  { %687 = vmatprep.subr.bf16.mxu1 %v752_v1 }
 0x124   :  { %689 = vmatpush3.bf16.msra.mxu1 %v688_v20 }
 0x125   :  { %690 = vmatprep.subr.bf16.mxu1 %v752_v1  ;;  %v441_v1 = vld [vmem:[%s983_s6] ss:$0 sm:$0xff] }
 0x128   :  { %692 = vmatpush3.bf16.msra.mxu1 %v691_v28 }
 0x1de   :  { %v238_v22 = vpop.f32.mrb[0].mxu1 }
 0x1df   :  { %v239_v23 = vadd.f32 %v440_v21, %v238_v22  ;;  %v544_v24 = vpop.f32.mrb[1].mxu1 }
 0x1e1   :  { %v242_v25 = vmax.f32 %v239_v23, 0.0 }
 0x1e3   :  { %578 = vmatmul.mubr.f32.vlgmr.msra.gmra.mrb[2].mxu0 %v242_v25 }
 0x2b6   :  { %v332_v29 = vpop.f32.mrb[2].mxu0 }
 0x2b7   :  { %v333_v30 = vadd.f32 %v441_v1, %v332_v29  ;;  %v579_v31 = vpop.f32.mrb[3].mxu0 }
 0x2b9   :  { %v336_v32 = vmax.f32 %v333_v30, 0.0 }
 0x2bb   :  { %613 = vmatmul.mubr.f32.vlgmr.msra.gmra.mrb[2].mxu1 %v336_v32 }
 0x38e   :  { %v426_v34 = vpop.f32.mrb[2].mxu1 }
 0x38f   :  { %v427_v35 = vadd.f32 %v442_v33, %v426_v34  ;;  %v614_v36 = vpop.f32.mrb[3].mxu1 }
 0x391   :  { %431 = vst.msk [vmem:[%s986_s9] sm:$0xff] %vm430_vm2, %v427_v35 }
 0x392   :  { %436 = vsyncpa [#allocation4], 1 }
 0x393   :  { %437 = vsyncpa [#allocation6], 1 }

// kernel: tpu_custom_call.1
= control target key start
LH: loop header
LB: loop body
LE: loop exit
PB: predicated region body
PF: predicated region fallthrough
CT: control target
= control target key end

     0   :  { %s977_s0 = inlined_call_operand.vmem [shape: f32[8,32], index: 0, kind: input, shape index: {}]   ;;  %s978_s1 = inlined_call_operand.hbm [shape: f32[32,128], index: 1, kind: input, shape index: {}]   ;;  %s979_s2 = inlined_call_operand.vmem [shape: f32[1,128], index: 2, kind: input, shape index: {}]   ;;  %s980_s3 = inlined_call_operand.vmem [shape: f32[128,128], index: 3, kind: input, shape index: {}]   ;;  %s981_s4 = inlined_call_operand.vmem [shape: f32[1,128], index: 4, kind: input, shape index: {}]   ;;  %s982_s5 = inlined_call_operand.hbm [shape: f32[128,128], index: 5, kind: input, shape index: {}]   ;;  %s983_s6 = inlined_call_operand.vmem [shape: f32[1,128], index: 6, kind: input, shape index: {}]   ;;  %s984_s7 = inlined_call_operand.vmem [shape: f32[128,1], index: 7, kind: input, shape index: {}]   ;;  %s985_s8 = inlined_call_operand.<no memory space> [shape: f32[1,1], index: 8, kind: input, shape index: {}]   ;;  %s986_s9 = inlined_call_operand.vmem [shape: f32[8,1], index: 9, kind: output, shape index: {}]  }
   0x1   :  { %v14_v0 = vstv %s985_s8 }
   0x2   :  { %15 = vst [vmem:[#allocation2] sm:$0x1] %v14_v0 }
   0x3   :  { %16 = vsyncpa [#allocation4], 0 }
   0x4   :  { %17 = vsyncpa [#allocation6], 0  ;;  %s748_s11 = smov [#allocation3]   ;;  %s700_s15 = scalar_lea.hbm %s978_s1, 512 }
   0x5   :  { %s25_s12 = sshll.u32 %s748_s11, 4  ;;  %p701_p0 = scmp.ne.s32.totalorder %s978_s1, %s700_s15  ;;  %s26_s12 = int_to_ptr.vmem [resolvable:$true] %s25_s12 }
   0x6   :  { %p704_p1 = scmp.lt.u32.totalorder %s700_s15, %s978_s1 }
   0x8   :  { %p706_p2 = pnand %p704_p1, %p701_p0 }
   0xa   :  { %709 = shalt.err (!%p706_p2)
}
   0xb   :  { %s710_s8 = scalar_lea.vmem %s26_s12, 512  ;;  %p715_p4 = scmp.lt.s32.totalorder %s26_s12, %s26_s12 }
   0xc   :  { %p711_p3 = scmp.ne.s32.totalorder %s26_s12, %s710_s8  ;;  %p716_p5 = scmp.lt.s32.totalorder %s710_s8, %s710_s8 }
   0xe   :  { %p717_p6 = por %p716_p5, %p715_p4 }
  0x10   :  { %p718_p7 = pnand %p717_p6, %p711_p3 }
  0x12   :  { %721 = shalt.err (!%p718_p7)
}
  0x13   :  { %s749_s20 = smov 128   ;;  %s750_s21 = smov 8  }
  0x14   :  { %31 = dma.hbm_to_vmem [thread:$0]  %s978_s1, 512, %s26_s12, [#allocation4], %s749_s20, %s749_s20, %s750_s21  }
  0x15   :  { %s751_s24 = smov [#allocation5]   ;;  %s722_s28 = scalar_lea.hbm %s982_s5, 2048 }
  0x16   :  { %s43_s25 = sshll.u32 %s751_s24, 4  ;;  %p723_p8 = scmp.ne.s32.totalorder %s982_s5, %s722_s28  ;;  %s44_s25 = int_to_ptr.vmem [resolvable:$true] %s43_s25 }
  0x17   :  { %p726_p9 = scmp.lt.u32.totalorder %s722_s28, %s982_s5 }
  0x19   :  { %p728_p10 = pnand %p726_p9, %p723_p8 }
  0x1b   :  { %731 = shalt.err (!%p728_p10)
}
  0x1c   :  { %s732_s13 = scalar_lea.vmem %s44_s25, 2048  ;;  %p737_p12 = scmp.lt.s32.totalorder %s44_s25, %s44_s25 }
  0x1d   :  { %p733_p11 = scmp.ne.s32.totalorder %s44_s25, %s732_s13  ;;  %p738_p13 = scmp.lt.s32.totalorder %s732_s13, %s732_s13 }
  0x1f   :  { %p739_p0 = por %p738_p13, %p737_p12 }
  0x21   :  { %p740_p1 = pnand %p739_p0, %p733_p11 }
  0x23   :  { %743 = shalt.err (!%p740_p1)
}
  0x24   :  { %49 = dma.hbm_to_vmem [thread:$0]  %s982_s5, 2048, %s44_s25, [#allocation6], %s749_s20, %s749_s20, %s750_s21  }
  0x25   :  { %744 = dma.done.wait [#allocation4], 512  }
  0x26   :  { %745 = vsyncadd [#allocation4], 4294966784 }
  0x27   :  { %746 = dma.done.wait [#allocation6], 2048  }
  0x28   :  { %747 = vsyncadd [#allocation6], 4294965248  ;;  %v752_v1 = vmov 0.0|0.0   ;;  %vm753_vm0 = vmmov 0   ;;  %v754_v2 = vmov 0.0   ;;  %v63_v3 = vld [vmem:[#allocation3] sm:$0xff] }
  0x29   :  { %615 = vmatprep.subr.bf16.mxu0 %v752_v1  ;;  %507 = vmatprep.mubr.msk.f32.mxu0 %vm753_vm0, %v754_v2  ;;  %v64_v4 = vld [vmem:[#allocation3 + $0x8] sm:$0xff]  ;;  %v65_v5 = vld [vmem:[#allocation3 + $0x10] sm:$0xff]  ;;  %v66_v7 = vld [vmem:[#allocation3 + $0x18] sm:$0xff]  ;;  %vm74_vm1 = vcmask 261120   ;;  %vm430_vm2 = vcmask 7168  }
  0x2a   :  { %621 = vmatprep.subr.bf16.mxu1 %v752_v1  ;;  %542 = vmatprep.mubr.msk.f32.mxu1 %vm753_vm0, %v754_v2  ;;  %v616_v6 = vpack.c.bf16 %v64_v4, %v63_v3  ;;  %v149_v8 = vld [vmem:[%s980_s3] sm:$0xff]  ;;  %v150_v9 = vld [vmem:[%s980_s3 + $0x8] sm:$0xff]  ;;  %v151_v10 = vld [vmem:[%s980_s3 + $0x10] sm:$0xff]  ;;  %v619_v12 = vpack.c.bf16 %v66_v7, %v65_v5 }
  0x2b   :  { %v152_v11 = vld [vmem:[%s980_s3 + $0x18] sm:$0xff]  ;;  %v622_v13 = vpack.c.bf16 %v150_v9, %v149_v8  ;;  %v153_v15 = vld [vmem:[%s980_s3 + $0x20] sm:$0xff]  ;;  %v154_v16 = vld [vmem:[%s980_s3 + $0x28] sm:$0xff] }
  0x2c   :  { %617 = vmatpush3.bf16.msra.mxu0 %v616_v6  ;;  %v625_v14 = vpack.c.bf16 %v152_v11, %v151_v10  ;;  %v62_v17 = vld [vmem:[%s977_s0] sm:$0xff]  ;;  %v628_v18 = vpack.c.bf16 %v154_v16, %v153_v15  ;;  %v155_v19 = vld [vmem:[%s980_s3 + $0x30] sm:$0xff]  ;;  %v156_v20 = vld [vmem:[%s980_s3 + $0x38] sm:$0xff] }
  0x2d   :  { %618 = vmatprep.subr.bf16.mxu0 %v752_v1  ;;  %623 = vmatpush3.bf16.msra.mxu1 %v622_v13  ;;  %v631_v21 = vpack.c.bf16 %v156_v20, %v155_v19  ;;  %v157_v22 = vld [vmem:[%s980_s3 + $0x40] sm:$0xff]  ;;  %v158_v23 = vld [vmem:[%s980_s3 + $0x48] sm:$0xff]  ;;  %v159_v25 = vld [vmem:[%s980_s3 + $0x50] sm:$0xff] }
  0x2e   :  { %624 = vmatprep.subr.bf16.mxu1 %v752_v1  ;;  %v634_v24 = vpack.c.bf16 %v158_v23, %v157_v22  ;;  %v160_v26 = vld [vmem:[%s980_s3 + $0x58] sm:$0xff]  ;;  %v161_v28 = vld [vmem:[%s980_s3 + $0x60] sm:$0xff]  ;;  %v162_v29 = vld [vmem:[%s980_s3 + $0x68] sm:$0xff] }
  0x2f   :  { %v637_v27 = vpack.c.bf16 %v160_v26, %v159_v25  ;;  %v640_v30 = vpack.c.bf16 %v162_v29, %v161_v28  ;;  %v163_v31 = vld [vmem:[%s980_s3 + $0x70] sm:$0xff]  ;;  %v164_v32 = vld [vmem:[%s980_s3 + $0x78] sm:$0xff]  ;;  %v243_v34 = vld [vmem:[#allocation5] sm:$0xff] }
  0x30   :  { %620 = vmatpush3.bf16.msra.mxu0 %v619_v12  ;;  %v643_v33 = vpack.c.bf16 %v164_v32, %v163_v31  ;;  %v244_v35 = vld [vmem:[#allocation5 + $0x8] sm:$0xff]  ;;  %v245_v36 = vld [vmem:[#allocation5 + $0x10] sm:$0xff]  ;;  %v246_v38 = vld [vmem:[#allocation5 + $0x18] sm:$0xff] }
  0x31   :  { %645 = vmatprep.subr.bf16.mxu0 %v752_v1  ;;  %626 = vmatpush3.bf16.msra.mxu1 %v625_v14  ;;  %v646_v37 = vpack.c.bf16 %v244_v35, %v243_v34  ;;  %v649_v39 = vpack.c.bf16 %v246_v38, %v245_v36  ;;  %v247_v40 = vld [vmem:[#allocation5 + $0x20] sm:$0xff]  ;;  %v248_v41 = vld [vmem:[#allocation5 + $0x28] sm:$0xff]  ;;  %v249_v43 = vld [vmem:[#allocation5 + $0x30] sm:$0xff] }
  0x32   :  { %627 = vmatprep.subr.bf16.mxu1 %v752_v1  ;;  %v652_v42 = vpack.c.bf16 %v248_v41, %v247_v40  ;;  %v250_v44 = vld [vmem:[#allocation5 + $0x38] sm:$0xff]  ;;  %v251_v46 = vld [vmem:[#allocation5 + $0x40] sm:$0xff]  ;;  %v252_v47 = vld [vmem:[#allocation5 + $0x48] sm:$0xff] }
  0x33   :  { %508 = vmatmul.mubr.msk.f32.vlgmr.msra.gmra.mrb[0].mxu0 %vm74_vm1, %v62_v17  ;;  %v655_v45 = vpack.c.bf16 %v250_v44, %v249_v43  ;;  %v658_v48 = vpack.c.bf16 %v252_v47, %v251_v46  ;;  %v253_v49 = vld [vmem:[#allocation5 + $0x50] sm:$0xff]  ;;  %v254_v50 = vld [vmem:[#allocation5 + $0x58] sm:$0xff]  ;;  %v255_v52 = vld [vmem:[#allocation5 + $0x60] sm:$0xff] }
  0x34   :  { %577 = vmatprep.mubr.msk.f32.mxu0 %vm753_vm0, %v754_v2  ;;  %647 = vmatpush3.bf16.msra.mxu0 %v646_v37  ;;  %v661_v51 = vpack.c.bf16 %v254_v50, %v253_v49  ;;  %v256_v53 = vld [vmem:[#allocation5 + $0x68] sm:$0xff]  ;;  %v438_v55 = vld [vmem:[%s979_s2] ss:$0 sm:$0xff]  ;;  %v257_v60 = vld [vmem:[#allocation5 + $0x70] sm:$0xff] }
  0x35   :  { %629 = vmatpush3.bf16.msra.mxu1 %v628_v18  ;;  %648 = vmatprep.subr.bf16.mxu0 %v752_v1  ;;  %v664_v54 = vpack.c.bf16 %v256_v53, %v255_v52  ;;  %v258_v61 = vld [vmem:[#allocation5 + $0x78] sm:$0xff]  ;;  %v338_v0 = vld [vmem:[%s984_s7 + $0x8] sm:$0xff]  ;;  %v339_v3 = vld [vmem:[%s984_s7 + $0x10] sm:$0xff] }
  0x36   :  { %630 = vmatprep.subr.bf16.mxu1 %v752_v1  ;;  %v667_v62 = vpack.c.bf16 %v258_v61, %v257_v60  ;;  %v337_v63 = vld [vmem:[%s984_s7] sm:$0xff]  ;;  %v342_v7 = vld [vmem:[%s984_s7 + $0x28] sm:$0xff]  ;;  %v343_v9 = vld [vmem:[%s984_s7 + $0x30] sm:$0xff] }
  0x37   :  { %v670_v4 = vpack.c.bf16 %v338_v0, %v337_v63  ;;  %v341_v6 = vld [vmem:[%s984_s7 + $0x20] sm:$0xff]  ;;  %v344_v10 = vld [vmem:[%s984_s7 + $0x38] sm:$0xff]  ;;  %v346_v13 = vld [vmem:[%s984_s7 + $0x48] sm:$0xff] }
  0x38   :  { %650 = vmatpush3.bf16.msra.mxu0 %v649_v39  ;;  %v676_v8 = vpack.c.bf16 %v342_v7, %v341_v6  ;;  %v679_v11 = vpack.c.bf16 %v344_v10, %v343_v9  ;;  %v345_v12 = vld [vmem:[%s984_s7 + $0x40] sm:$0xff]  ;;  %v347_v15 = vld [vmem:[%s984_s7 + $0x50] sm:$0xff]  ;;  %v348_v16 = vld [vmem:[%s984_s7 + $0x58] sm:$0xff] }
  0x39   :  { %632 = vmatpush3.bf16.msra.mxu1 %v631_v21  ;;  %651 = vmatprep.subr.bf16.mxu0 %v752_v1  ;;  %v682_v14 = vpack.c.bf16 %v346_v13, %v345_v12  ;;  %v685_v17 = vpack.c.bf16 %v348_v16, %v347_v15  ;;  %v349_v18 = vld [vmem:[%s984_s7 + $0x60] sm:$0xff]  ;;  %v350_v19 = vld [vmem:[%s984_s7 + $0x68] sm:$0xff]  ;;  %v351_v26 = vld [vmem:[%s984_s7 + $0x70] sm:$0xff] }
  0x3a   :  { %633 = vmatprep.subr.bf16.mxu1 %v752_v1  ;;  %v688_v20 = vpack.c.bf16 %v350_v19, %v349_v18  ;;  %v440_v21 = vld [vmem:[%s981_s4] ss:$0 sm:$0xff] }
  0x3c   :  { %653 = vmatpush3.bf16.msra.mxu0 %v652_v42 }
  0x3d   :  { %635 = vmatpush3.bf16.msra.mxu1 %v634_v24  ;;  %654 = vmatprep.subr.bf16.mxu0 %v752_v1 }
  0x3e   :  { %636 = vmatprep.subr.bf16.mxu1 %v752_v1 }
  0x40   :  { %656 = vmatpush3.bf16.msra.mxu0 %v655_v45 }
  0x41   :  { %638 = vmatpush3.bf16.msra.mxu1 %v637_v27  ;;  %657 = vmatprep.subr.bf16.mxu0 %v752_v1  ;;  %v352_v27 = vld [vmem:[%s984_s7 + $0x78] sm:$0xff] }
  0x42   :  { %639 = vmatprep.subr.bf16.mxu1 %v752_v1  ;;  %v691_v28 = vpack.c.bf16 %v352_v27, %v351_v26 }
  0x44   :  { %659 = vmatpush3.bf16.msra.mxu0 %v658_v48 }
  0x45   :  { %641 = vmatpush3.bf16.msra.mxu1 %v640_v30  ;;  %660 = vmatprep.subr.bf16.mxu0 %v752_v1 }
  0x46   :  { %642 = vmatprep.subr.bf16.mxu1 %v752_v1 }
  0x48   :  { %662 = vmatpush3.bf16.msra.mxu0 %v661_v51 }
  0x49   :  { %644 = vmatpush3.bf16.msra.mxu1 %v643_v33  ;;  %663 = vmatprep.subr.bf16.mxu0 %v752_v1  ;;  %v442_v33 = vld [vmem:[#allocation2] ss:$0 sm:$0xff] }
  0x4a   :  { %669 = vmatprep.subr.bf16.mxu1 %v752_v1 }
  0x4c   :  { %665 = vmatpush3.bf16.msra.mxu0 %v664_v54 }
  0x4d   :  { %666 = vmatprep.subr.bf16.mxu0 %v752_v1 }
  0x50   :  { %668 = vmatpush3.bf16.msra.mxu0 %v667_v62 }
 0x106   :  { %v144_v56 = vpop.f32.mrb[0].mxu0 }
 0x107   :  { %v145_v57 = vadd.f32 %v438_v55, %v144_v56  ;;  %v509_v58 = vpop.f32.mrb[1].mxu0 }
 0x109   :  { %v148_v59 = vmax.f32 %v145_v57, 0.0 }
 0x10b   :  { %543 = vmatmul.mubr.f32.vlgmr.msra.gmra.mrb[0].mxu1 %v148_v59 }
 0x10c   :  { %612 = vmatprep.mubr.msk.f32.mxu1 %vm753_vm0, %v754_v2  ;;  %v340_v2 = vld [vmem:[%s984_s7 + $0x18] sm:$0xff]  ;;  %671 = vmatpush3.bf16.msra.mxu1 %v670_v4 }
 0x10d   :  { %v673_v5 = vpack.c.bf16 %v340_v2, %v339_v3  ;;  %672 = vmatprep.subr.bf16.mxu1 %v752_v1 }
 0x110   :  { %674 = vmatpush3.bf16.msra.mxu1 %v673_v5 }
 0x111   :  { %675 = vmatprep.subr.bf16.mxu1 %v752_v1 }
 0x114   :  { %677 = vmatpush3.bf16.msra.mxu1 %v676_v8 }
 0x115   :  { %678 = vmatprep.subr.bf16.mxu1 %v752_v1 }
 0x118   :  { %680 = vmatpush3.bf16.msra.mxu1 %v679_v11 }
 0x119   :  { %681 = vmatprep.subr.bf16.mxu1 %v752_v1 }
 0x11c   :  { %683 = vmatpush3.bf16.msra.mxu1 %v682_v14 }
 0x11d   :  { %684 = vmatprep.subr.bf16.mxu1 %v752_v1 }
 0x120   :  { %686 = vmatpush3.bf16.msra.mxu1 %v685_v17 }
 0x121   :  { %687 = vmatprep.subr.bf16.mxu1 %v752_v1 }
 0x124   :  { %689 = vmatpush3.bf16.msra.mxu1 %v688_v20 }
 0x125   :  { %690 = vmatprep.subr.bf16.mxu1 %v752_v1  ;;  %v441_v1 = vld [vmem:[%s983_s6] ss:$0 sm:$0xff] }
 0x128   :  { %692 = vmatpush3.bf16.msra.mxu1 %v691_v28 }
 0x1de   :  { %v238_v22 = vpop.f32.mrb[0].mxu1 }
 0x1df   :  { %v239_v23 = vadd.f32 %v440_v21, %v238_v22  ;;  %v544_v24 = vpop.f32.mrb[1].mxu1 }
 0x1e1   :  { %v242_v25 = vmax.f32 %v239_v23, 0.0 }
 0x1e3   :  { %578 = vmatmul.mubr.f32.vlgmr.msra.gmra.mrb[2].mxu0 %v242_v25 }
 0x2b6   :  { %v332_v29 = vpop.f32.mrb[2].mxu0 }
 0x2b7   :  { %v333_v30 = vadd.f32 %v441_v1, %v332_v29  ;;  %v579_v31 = vpop.f32.mrb[3].mxu0 }
 0x2b9   :  { %v336_v32 = vmax.f32 %v333_v30, 0.0 }
 0x2bb   :  { %613 = vmatmul.mubr.f32.vlgmr.msra.gmra.mrb[2].mxu1 %v336_v32 }
 0x38e   :  { %v426_v34 = vpop.f32.mrb[2].mxu1 }
 0x38f   :  { %v427_v35 = vadd.f32 %v442_v33, %v426_v34  ;;  %v614_v36 = vpop.f32.mrb[3].mxu1 }
 0x391   :  { %431 = vst.msk [vmem:[%s986_s9] sm:$0xff] %vm430_vm2, %v427_v35 }
 0x392   :  { %436 = vsyncpa [#allocation4], 1 }
 0x393   :  { %437 = vsyncpa [#allocation6], 1 }

</bundles_post_ra>
